<compile_context>
chip_gen: v7x
topology: tpu7x:2x2x1
jax: 0.10.0
libtpu: 0.0.40
codegen_flags: <defaults>
</compile_context>

<pallas_src>
import functools

import jax
import jax.numpy as jnp
from jax.experimental import pallas as pl
from jax.experimental.pallas import tpu as pltpu


def _patch_sim_kernel(mean_ref, q_ref, x_ref, out_ref, *, eps):
    # mean_ref: (bt, C, 1)   f32   per-(b,c) spatial mean (wrapper-computed)
    # q_ref:    (bt, C, num) model dtype, raw gathered query columns
    # x_ref:    (bt, C, st)  model dtype, one S tile of the key features
    # out_ref:  (bt, num, st)
    m = mean_ref[...]                                               # (bt, C, 1)

    # --- query side (tiny: num columns; recomputed per S tile, negligible) ---
    qc = q_ref[...].astype(jnp.float32) - m                         # (bt, C, num)
    row_norm = jnp.sqrt(jnp.sum(qc * qc, axis=1, keepdims=True))    # (bt, 1, num)
    qn = qc / jnp.maximum(row_norm, eps)                            # exact div (tiny)
    qn_t = jnp.swapaxes(qn, 1, 2).astype(jnp.bfloat16)              # (bt, num, C)

    # --- key side: single f32 pass, stats + bf16 matmul operand ---
    xc = x_ref[...].astype(jnp.float32) - m                         # (bt, C, st)
    col_norm = jnp.sqrt(jnp.sum(xc * xc, axis=1, keepdims=True))    # (bt, 1, st)
    inv_col = pl.reciprocal(jnp.maximum(col_norm, eps), approx=True)
    xc_bf = xc.astype(jnp.bfloat16)                                 # f32 xc dies here

    # --- similarity: unrolled 2D dots (MXU fill irrelevant, kernel is mem-bound)
    bt = out_ref.shape[0]
    for b in range(bt):
        sim = jnp.dot(qn_t[b], xc_bf[b], preferred_element_type=jnp.float32)
        out_ref[b, :, :] = (sim * inv_col[b]).astype(out_ref.dtype)


def _pick_s_tile(S, per_lane_bytes, budget):
    """Lane tile: multiple of 128 dividing S (512-2048 preferred) fitting budget."""
    if S % 128 != 0:
        return S                      # not lane-aligned: single (masked-store) tile
    if S <= 2048 and S * per_lane_bytes <= budget:
        return S
    for cand in (2048, 1024, 512, 256, 128):
        if S % cand == 0 and cand * per_lane_bytes <= budget:
            return cand
    for cand in (128, 256, 512, 1024, 2048):
        if S % cand == 0:
            return cand
    return S


def patch_sim_forward(feat_nchw, patch_nums=8, patch_ids=None, *, patch_size=None,
                      rng=None, eps=1e-12, batch_tile=None, out_dtype=jnp.float32):
    """PatchSim.forward (norm=True, patch_nums>0, global-key branch).

    Returns (patch_sim, patch_ids) with patch_sim of shape (B, Num, W*H).
    `out_dtype` may be set to the model dtype to halve output HBM writes.
    """
    B, C, W, H = feat_nchw.shape
    S = W * H

    if patch_size is not None and patch_size < W and patch_size < H:
        # TODO(synk): local pw x ph key-window branch not implemented.
        raise NotImplementedError("PatchSim local-window branch is not supported.")
    if patch_nums <= 0 and patch_ids is None:
        # TODO(synk): all-positions query branch not implemented.
        raise NotImplementedError("PatchSim patch_nums<=0 branch is not supported.")

    if patch_ids is None:
        # torch.randperm(W*H)[:min(patch_nums, W*H)]
        patch_ids = jax.random.permutation(rng, S)[: min(patch_nums, S)]
    patch_ids = jnp.asarray(patch_ids, dtype=jnp.int32)
    num = int(patch_ids.shape[0])

    # Keep feat in the model dtype (no f32 HBM copy). Small side products:
    feat = feat_nchw.reshape(B, C, S)
    mean = jnp.mean(feat, axis=2, keepdims=True, dtype=jnp.float32)   # (B, C, 1)
    q_raw = jnp.take(feat, patch_ids, axis=2)                         # (B, C, num)

    # Batch fold: only amortizes per-step overhead for tiny C, and always keeps
    # >= 2 steps on the batch axis so both v7x TensorCores get work.
    if batch_tile is None:
        bt = 1
        if C < 8 and B >= 4:
            want = max(1, min(B // 2, -(-8 // C)))
            for cand in range(want, 0, -1):
                if B % cand == 0:
                    bt = cand
                    break
    else:
        bt = int(batch_tile)
    assert B % bt == 0, (B, bt)

    # Hardware-aware VMEM budgeting (v7x has only 64 MiB / TC; v5e/v6e 128 MiB).
    try:
        vmem_cap = int(getattr(pltpu.get_tpu_info(), "vmem_capacity_bytes",
                               64 * 2**20))
    except Exception:
        vmem_cap = 64 * 2**20
    itemsize = jnp.dtype(feat.dtype).itemsize
    out_itemsize = jnp.dtype(out_dtype).itemsize

    # bytes of VMEM per lane-column of one S tile (feat buffers + f32/bf16 temps + out)
    per_lane = bt * (C * (2 * itemsize + 4 + 2) + num * (4 + 2 * out_itemsize))
    s_tile = _pick_s_tile(S, per_lane, budget=vmem_cap // 3)
    n_s = S // s_tile

    # Deeper input buffering only where VMEM allows (v5e/v6e) and it can help.
    n_buf = 3 if (vmem_cap >= 100 * 2**20 and n_s >= 3) else 2

    feat_blk = bt * C * s_tile * itemsize
    needed = (n_buf * feat_blk                                 # feat buffers
              + 2 * bt * num * s_tile * out_itemsize           # out buffers
              + 2 * bt * C * (num * itemsize + 4)              # q + mean buffers
              + bt * C * s_tile * (4 + 2)                      # xc f32 + bf16
              + bt * num * s_tile * 4)                         # sim f32
    vmem_limit = int(min(max(2 * needed, 16 * 2**20),
                         max(int(vmem_cap * 0.85), needed + (2 << 20))))

    feat_spec_kwargs = {}
    if n_buf == 3:
        feat_spec_kwargs["pipeline_mode"] = pl.Buffered(3)

    kernel = functools.partial(_patch_sim_kernel, eps=eps)
    patch_sim = pl.pallas_call(
        kernel,
        out_shape=jax.ShapeDtypeStruct((B, num, S), out_dtype),
        grid=(B // bt, n_s),
        in_specs=[
            pl.BlockSpec((bt, C, 1), lambda b, s: (b, 0, 0)),       # mean
            pl.BlockSpec((bt, C, num), lambda b, s: (b, 0, 0)),     # raw queries
            pl.BlockSpec((bt, C, s_tile), lambda b, s: (b, 0, s),   # key tile
                         **feat_spec_kwargs),
        ],
        out_specs=pl.BlockSpec((bt, num, s_tile), lambda b, s: (b, 0, s)),
        compiler_params=pltpu.CompilerParams(
            dimension_semantics=("parallel", "parallel"),
            vmem_limit_bytes=vmem_limit),
    )(mean, q_raw, feat)
    return patch_sim, patch_ids


def _ref_forward(feat, patch_ids, eps=1e-12):
    """Pure-JAX f32 reference mirroring the PyTorch forward (global-key branch)."""
    B, C, W, H = feat.shape
    feat = feat.astype(jnp.float32)
    feat = feat - feat.mean(axis=(2, 3), keepdims=True)
    norm = jnp.sqrt(jnp.sum(feat * feat, axis=1, keepdims=True))
    featn = feat / jnp.maximum(norm, eps)
    q = featn.transpose(0, 2, 3, 1).reshape(B, W * H, C)[:, patch_ids, :]
    k = featn.reshape(B, C, W * H)
    return jnp.einsum("bnc,bcs->bns", q, k)


if __name__ == "__main__":
    key = jax.random.PRNGKey(0)
    k_feat, k_perm = jax.random.split(key)

    # PatchSim(patch_nums=8, norm=True) on a (2, 4, 16, 16) input.
    B, C, W, H = 2, 4, 16, 16
    patch_nums = 8
    feat = jax.random.normal(k_feat, (B, C, W, H), dtype=jnp.float32)

    patch_sim, patch_ids = patch_sim_forward(feat, patch_nums=patch_nums,
                                             rng=k_perm)
    patch_sim = jax.block_until_ready(patch_sim)

    ref = _ref_forward(feat, patch_ids)
    assert patch_sim.shape == (B, patch_nums, W * H), patch_sim.shape
    # bf16 MXU operands + approx reciprocal on the key norms => loose tolerance.
    assert jnp.allclose(patch_sim, ref, atol=2e-2, rtol=2e-2), (
        float(jnp.max(jnp.abs(patch_sim - ref))))
    print("KERNEL_OK")
</pallas_src>

<mosaic_0001>
module attributes {stable_mosaic.version = 11 : i64} {
  func.func @_patch_sim_kernel(%arg0: i32, %arg1: i32, %arg2: memref<1x4x1xf32, #tpu.memory_space<vmem>>, %arg3: memref<1x4x8xf32, #tpu.memory_space<vmem>>, %arg4: memref<1x4x256xf32, #tpu.memory_space<vmem>>, %arg5: memref<1x8x256xf32, #tpu.memory_space<vmem>>) attributes {dimension_semantics = [#tpu.dimension_semantics<parallel>, #tpu.dimension_semantics<parallel>], iteration_bounds = array<i64: 2, 1>, scalar_prefetch = 0 : i64, scratch_operands = 0 : i64, tpu.core_type = #tpu.core_type<tc>, window_params = [{transform_indices = @transform_0, window_bounds = array<i64: 1, 4, 1>}, {transform_indices = @transform_1, window_bounds = array<i64: 1, 4, 8>}, {transform_indices = @transform_2, window_bounds = array<i64: 1, 4, 256>}, {transform_indices = @transform_3, window_bounds = array<i64: 1, 8, 256>}]} {
    %c0 = arith.constant 0 : index
    %c0_0 = arith.constant 0 : index
    %c0_1 = arith.constant 0 : index
    %0 = vector.load %arg2[%c0, %c0_0, %c0_1] : memref<1x4x1xf32, #tpu.memory_space<vmem>>, vector<1x4x1xf32>
    %c0_2 = arith.constant 0 : index
    %c0_3 = arith.constant 0 : index
    %c0_4 = arith.constant 0 : index
    %1 = vector.load %arg3[%c0_2, %c0_3, %c0_4] : memref<1x4x8xf32, #tpu.memory_space<vmem>>, vector<1x4x8xf32>
    %2 = vector.broadcast %0 : vector<1x4x1xf32> to vector<1x4x8xf32>
    %3 = arith.subf %1, %2 : vector<1x4x8xf32>
    %4 = arith.mulf %3, %3 : vector<1x4x8xf32>
    %cst = arith.constant dense<0.000000e+00> : vector<1x8xf32>
    %5 = vector.multi_reduction <add>, %4, %cst [1] : vector<1x4x8xf32> to vector<1x8xf32>
    %6 = vector.shape_cast %5 : vector<1x8xf32> to vector<1x1x8xf32>
    %7 = math.sqrt %6 : vector<1x1x8xf32>
    %cst_5 = arith.constant 9.99999996E-13 : f32
    %8 = vector.broadcast %cst_5 : f32 to vector<1x1x8xf32>
    %9 = arith.maximumf %7, %8 : vector<1x1x8xf32>
    %10 = vector.broadcast %9 : vector<1x1x8xf32> to vector<1x4x8xf32>
    %11 = arith.divf %3, %10 : vector<1x4x8xf32>
    %12 = tpu.transpose %11, [0, 2, 1] : vector<1x4x8xf32> -> vector<1x8x4xf32>
    %13 = arith.truncf %12 : vector<1x8x4xf32> to vector<1x8x4xbf16>
    %c0_6 = arith.constant 0 : index
    %c0_7 = arith.constant 0 : index
    %c0_8 = arith.constant 0 : index
    %14 = vector.load %arg4[%c0_6, %c0_7, %c0_8] : memref<1x4x256xf32, #tpu.memory_space<vmem>>, vector<1x4x256xf32>
    %15 = vector.broadcast %0 : vector<1x4x1xf32> to vector<1x4x256xf32>
    %16 = arith.subf %14, %15 : vector<1x4x256xf32>
    %17 = arith.mulf %16, %16 : vector<1x4x256xf32>
    %cst_9 = arith.constant dense<0.000000e+00> : vector<1x256xf32>
    %18 = vector.multi_reduction <add>, %17, %cst_9 [1] : vector<1x4x256xf32> to vector<1x256xf32>
    %19 = vector.shape_cast %18 : vector<1x256xf32> to vector<1x1x256xf32>
    %20 = math.sqrt %19 : vector<1x1x256xf32>
    %cst_10 = arith.constant 9.99999996E-13 : f32
    %21 = vector.broadcast %cst_10 : f32 to vector<1x1x256xf32>
    %22 = arith.maximumf %20, %21 : vector<1x1x256xf32>
    %23 = tpu.reciprocal %22 {approx = true} : vector<1x1x256xf32> -> vector<1x1x256xf32>
    %24 = arith.truncf %16 : vector<1x4x256xf32> to vector<1x4x256xbf16>
    %25 = vector.shape_cast %13 : vector<1x8x4xbf16> to vector<8x4xbf16>
    %26 = vector.shape_cast %24 : vector<1x4x256xbf16> to vector<4x256xbf16>
    %cst_11 = arith.constant dense<0.000000e+00> : vector<8x256xf32>
    %27 = tpu.matmul %25, %26, %cst_11 {dimension_numbers = #tpu.dot_dimension_numbers<[1], [0], [0], [1], [0, 0, 1, 1], [], []>} : vector<8x4xbf16>, vector<4x256xbf16>, vector<8x256xf32> -> vector<8x256xf32>
    %28 = vector.shape_cast %23 : vector<1x1x256xf32> to vector<1x256xf32>
    %29 = vector.broadcast %28 : vector<1x256xf32> to vector<8x256xf32>
    %30 = arith.mulf %27, %29 : vector<8x256xf32>
    %c0_12 = arith.constant 0 : index
    %c0_13 = arith.constant 0 : index
    %c0_14 = arith.constant 0 : index
    %31 = vector.load %arg5[%c0_12, %c0_13, %c0_14] : memref<1x8x256xf32, #tpu.memory_space<vmem>>, vector<1x8x256xf32>
    %32 = vector.shape_cast %31 : vector<1x8x256xf32> to vector<8x256xf32>
    %33 = vector.shape_cast %30 : vector<8x256xf32> to vector<1x8x256xf32>
    tpu.vector_store %arg5[%c0_12, %c0_13, %c0_14], %33 {strides = array<i32>} : memref<1x8x256xf32, #tpu.memory_space<vmem>>, vector<1x8x256xf32>,
    return
  }
  func.func @transform_0(%arg0: i32, %arg1: i32) -> (i32, i32, i32) {
    %c0_i32 = arith.constant 0 : i32
    %c0_i32_0 = arith.constant 0 : i32
    %c0_i32_1 = arith.constant 0 : i32
    return %arg0, %c0_i32, %c0_i32_0 : i32, i32, i32
  }
  func.func @transform_1(%arg0: i32, %arg1: i32) -> (i32, i32, i32) {
    %c0_i32 = arith.constant 0 : i32
    %c0_i32_0 = arith.constant 0 : i32
    %c0_i32_1 = arith.constant 0 : i32
    return %arg0, %c0_i32, %c0_i32_0 : i32, i32, i32
  }
  func.func @transform_2(%arg0: i32, %arg1: i32) -> (i32, i32, i32) {
    %c0_i32 = arith.constant 0 : i32
    %c0_i32_0 = arith.constant 0 : i32
    return %arg0, %c0_i32, %arg1 : i32, i32, i32
  }
  func.func @transform_3(%arg0: i32, %arg1: i32) -> (i32, i32, i32) {
    %c0_i32 = arith.constant 0 : i32
    %c0_i32_0 = arith.constant 0 : i32
    return %arg0, %c0_i32, %arg1 : i32, i32, i32
  }
}

</mosaic_0001>

<bundles_post_ra>
// kernel: tpu_custom_call.1
= control target key start
LH: loop header
LB: loop body
LE: loop exit
PB: predicated region body
PF: predicated region fallthrough
CT: control target
= control target key end

     0   :  { %8 = vsyncpa [#allocation3], 0  ;;  %s969_s0 = inlined_call_operand.vmem [shape: f32[2,4,1], index: 0, kind: input, shape index: {}]   ;;  %s970_s1 = inlined_call_operand.hbm [shape: f32[2,4,8], index: 1, kind: input, shape index: {}]   ;;  %s971_s2 = inlined_call_operand.vmem [shape: f32[2,4,256], index: 2, kind: input, shape index: {}]   ;;  %s972_s3 = inlined_call_operand.hbm [shape: f32[2,8,256], index: 3, kind: output, shape index: {}]  }
   0x1   :  { %10 = vsyncpa [#allocation3 + $0x1], 0 }
   0x2   :  { %11 = vsyncpa [#allocation4], 0 }
   0x3   :  { %13 = vsyncpa [#allocation4 + $0x1], 0  ;;  %s788_s12 = smov 0   ;;  %s790_s13 = smov 0  }
   0x4   :  { %s792_s14 = smov 0   ;;  %s794_s15 = smov 0  }
   0x5   :  { %s796_s16 = smov 0   ;;  %s798_s17 = smov 0  }
   0x6 LB: > { %s551_s18 = sadd.s32 4294967295, %s762_s17   ;;  %s552_s19 = sadd.s32 4294967294, %s762_s17   ;;  %s762_s17 = sphi %s798_s17, %s19_s17   ;;  %s758_s16 = sphi %s796_s16, %s988_s16   ;;  %s754_s15 = sphi %s794_s15, %s987_s15   ;;  %s750_s14 = sphi %s792_s14, %s986_s14   ;;  %s746_s13 = sphi %s790_s13, %s985_s13   ;;  %s742_s12 = sphi %s788_s12, %s984_s12  }
   0x7   : > { %s31_s20 = sadd.s32 1, %s758_s16  ;;  %s64_s21 = sadd.s32 1, %s750_s14 }
   0x8   : > { %p33_p0 = scmp.ge.s32.totalorder %s31_s20, 2  ;;  %p71_p1 = scmp.ne.s32.totalorder %s750_s14, %s746_s13 }
   0x9   : > { %p72_p2 = scmp.eq.s32.totalorder %s762_s17, 0  ;;  %p77_p3 = scmp.ne.s32.totalorder %s746_s13, %s742_s12 }
   0xa   : > { %s990_s20 = smov (%p33_p0, %s31_s20), 0  ;;  %p78_p5 = scmp.eq.s32.totalorder %s551_s18, 0 }
   0xb   : > { %p829_p4 = por %p72_p2, %p71_p1  ;;  %s61_s23 = ssub.s32 %s758_s16, %s990_s20 }
   0xc   : > { %p131_p6 = scmp.eq.s32.totalorder %s551_s18, 1  ;;  %p62_p7 = scmp.eq.s32.totalorder %s61_s23, 0 }
   0xd   : > { %p835_p8 = por %p78_p5, %p77_p3  ;;  %p137_p10 = scmp.eq.s32.totalorder %s552_s19, 1 }
   0xe   : > { %p839_p9 = por %p131_p6, %p71_p1  ;;  %p584_p13 = scmp.lt.s32.totalorder %s762_s17, 2 }
   0xf   : > { %s844_s26 = scalar_select %p62_p7, %s750_s14, %s64_s21  }
  0x10   : > { %s976_s25 = scalar_select %p839_p9, 1, 0 }
  0x11   : > { %p846_p11 = por %p137_p10, %p77_p3  ;;  %s164_s28 = sand.u32 1, %s750_s14  }
  0x12   : > { %s555_s29 = sshll.u32 %s164_s28, 2  ;;  %s556_s30 = sshll.u32 %s758_s16, 6 }
  0x13   : > { %s977_s27 = scalar_select %p846_p11, 1, 0 }
  0x14   : > { %s857_s6 = scalar_lea.hbm %s970_s1, %s556_s30  ;;  %s168_s7 = scalar_lea.vmem [#allocation2], %s555_s29 }
  0x15   : > { %s175_s8 = sshll.u32 %s168_s7, 4  ;;  %p863_p0 = pnand %p584_p13, %p829_p4  ;;  %s859_s8 = int_to_ptr.vmem [resolvable:$true] %s175_s8 }
  0x16   : > { %s165_s10 = scalar_lea.sflag [#allocation3], %s164_s28  ;;  %s650_s11 = scalar_lea.hbm %s857_s6, 64 }
  0x17   : > { %p651_p3 = scmp.ne.s32.totalorder %s857_s6, %s650_s11  ;;  %p652_p5 = pneg %p863_p0 }
  0x18   : > { %s655_s21 = scalar_lea.hbm %s970_s1, 128  ;;  %p656_p4 = scmp.lt.u32.totalorder %s857_s6, %s970_s1 }
  0x19   : > { %p653_p6 = pnand %p652_p5, %p651_p3  ;;  %p657_p10 = scmp.lt.u32.totalorder %s655_s21, %s650_s11 }
  0x1a   : > { %p659_p12 = scmp.lt.u32.totalorder %s650_s11, %s857_s6 }
  0x1b   : > { %p654_p7 = pneg %p653_p6  ;;  %p658_p13 = por %p657_p10, %p656_p4 }
  0x1d   : > { %p660_p1 = por %p659_p12, %p658_p13 }
  0x1f   : > { %p661_p2 = pnand %p660_p1, %p654_p7 }
  0x21   : > { %664 = shalt.err (!%p661_p2)
}
  0x22   : > { %s665_s28 = scalar_lea.vmem %s859_s8, 64  ;;  %s764_s29 = smov [#allocation2]  }
  0x23   : > { %p666_p3 = scmp.ne.s32.totalorder %s859_s8, %s665_s28  ;;  %s670_s30 = sshll.u32 %s764_s29, 4  ;;  %s671_s30 = int_to_ptr.vmem [resolvable:$false] %s670_s30 }
  0x24   : > { %s672_s4 = scalar_lea.vmem %s671_s30, 128  ;;  %p673_p9 = scmp.lt.s32.totalorder %s859_s8, %s671_s30 }
  0x25   : > { %p668_p6 = pnand %p666_p3, %p652_p5  ;;  %p674_p4 = scmp.lt.s32.totalorder %s672_s4, %s665_s28 }
  0x27   : > { %p669_p11 = pneg %p668_p6  ;;  %p675_p10 = por %p674_p4, %p673_p9 }
  0x29   : > { %p676_p12 = pnand %p675_p10, %p669_p11 }
  0x2b   : > { %679 = shalt.err (!%p676_p12)
}
  0x2c   : > { %579 = dma.hbm_to_vmem [thread:$0]  (!%p863_p0), %s857_s6, 64, %s859_s8, %s165_s10  }
  0x2d   : > { %p979_p1 = scmp.lt.s32.totalorder %s762_s17, 3  ;;  %p980_p2 = scmp.ge.s32.totalorder %s762_s17, 1 }
  0x2f   : > { %p194_p5 = pnand %p980_p2, %p979_p1 }
  0x30   : > { %s899_s5 = sand.u32 (!%p194_p5), 1, %s746_s13  }
  0x31   : > { %197 = sbr.rel (%p194_p5) target bundleno = 599 (0x257), region = 32  ;;  %s558_s7 = sshll.u32 (!%p194_p5), %s899_s5, 2 }
  0x32   : > { %s200_s11 = scalar_lea.sflag (!%p194_p5), [#allocation3], %s899_s5  ;;  %s203_s18 = scalar_lea.vmem (!%p194_p5), [#allocation2], %s558_s7 }
  0x38   : > { %733 = dma.done.wait (%p835_p8), %s200_s11, 64  }
  0x39   : > { %735 = vsyncadd (%p835_p8), %s200_s11, 4294967232  ;;  %p239_p9 = scmp.lt.s32.totalorder %s754_s15, 1  ;;  %v765_v0 = vmov 0   ;;  %v766_v2 = vmov 839922192   ;;  %v319_v4 = vlaneseq  ;;  %vm264_vm0 = vcmask 60416  }
  0x3a   : > { %637 = vset.pattern.permute.xlu0 %v765_v0  ;;  %410 = vmatprep.mubr.bf16.mxu0 %v765_v0  ;;  %v317_v3 = vunpack.c.l.s4 %v766_v2  ;;  %v256_v8 = vld [vmem:[%s203_s18] sm:$0xf]  ;;  %vm371_vm1 = vcmask 1041408   ;;  %vm367_vm4 = vcmask 31744   ;;  %vm329_vm5 = vcmask 1043456   ;;  %s559_s28 = sshll.u32 %s899_s5, 4 }
  0x3b   : > { %s240_s6 = scalar_select %p239_p9, %s754_s15, 1  ;;  %v320_v6 = vshrl.u32 %v319_v4, 7 }
  0x3c   : > { %v318_v5 = vunpack.c.0.s8 %v317_v3  ;;  %s571_s29 = sshll.u32 %s754_s15, 8  ;;  %s238_s30 = scalar_lea.vmem [#allocation5], %s559_s28 }
  0x3d   : > { %s560_s8 = sshll.u32 %s240_s6, 2  ;;  %s570_s24 = sshll.u32 %s240_s6, 3 }
  0x3e   : > { %s242_s19 = scalar_lea.vmem %s969_s0, %s560_s8  ;;  %s251_s23 = scalar_lea.vmem %s971_s2, %s570_s24  ;;  %v321_v7 = vsub.s32 %v318_v5, %v320_v6 }
  0x3f   : > { %v255_v1 = vld [vmem:[%s242_s19] sm:$0xf]  ;;  %s440_s4 = sshll.u32 %s238_s30, 4  ;;  %s920_s18 = scalar_lea.hbm %s972_s3, %s571_s29  ;;  %s922_s4 = int_to_ptr.vmem [resolvable:$true] %s440_s4 }
  0x40   : > { %259 = vperm.xlu0 %637, %v255_v1   ;;  %v315_v9 = vld [vmem:[%s251_s23] sm:$0xff]  ;;  %s424_s15 = scalar_lea.sflag [#allocation4], %s899_s5  ;;  %s680_s6 = scalar_lea.vmem %s922_s4, 256 }
  0x41   : > { %p681_p8 = scmp.ne.s32.totalorder %s922_s4, %s680_s6  ;;  %p981_p11 = scmp.ne.s32.totalorder %s976_s25, 0 }
  0x42   : > { %s767_s8 = smov [#allocation5]  }
  0x43   : > { %p682_p0 = pnand %p681_p8, %p981_p11  ;;  %s684_s9 = sshll.u32 %s767_s8, 4  ;;  %s685_s9 = int_to_ptr.vmem [resolvable:$false] %s684_s9 }
  0x44   : > { %s686_s10 = scalar_lea.vmem %s685_s9, 512  ;;  %p687_p13 = scmp.lt.s32.totalorder %s922_s4, %s685_s9 }
  0x45   : > { %p683_p7 = pneg %p682_p0  ;;  %p688_p3 = scmp.lt.s32.totalorder %s686_s10, %s680_s6 }
  0x47   : > { %p689_p6 = por %p688_p3, %p687_p13 }
  0x49   : > { %p690_p4 = pnand %p689_p6, %p683_p7 }
  0xbf   : > { %v260_v10 = vpop.permute.xlu0 %259 }
  0xc0   : > { %v262_v11 = vsub.f32 %v256_v8, %v260_v10  ;;  %v322_v12 = vrot.slane %v260_v10, %v321_v7 }
  0xc2   : > { %v263_v13 = vmul.f32 %v262_v11, %v262_v11  ;;  %v324_v14 = vsub.f32 %v315_v9, %v322_v12 }
  0xc4   : > { %v265_v15 = vsel %vm264_vm0, %v263_v13, 0.0  ;;  %v363_v16 = vcombine.high %v324_v14, %v324_v14  ;;  %v365_v17 = vpack.c.bf16 %v324_v14, %v324_v14  ;;  %v325_v36 = vmul.f32 %v324_v14, %v324_v14 }
  0xc5   : > { %v266_v18 = vrot.slane %v265_v15, 4 }
  0xc6   : > { %v366_v19 = vpack.c.bf16 %v363_v16, %v363_v16  ;;  %v373_v21 = vsel %vm371_vm1, %v365_v17, 0  ;;  %v327_v37 = vcombine.high %v325_v36, %v325_v36  ;;  %v330_v38 = vsel %vm329_vm5, %v325_v36, 0.0 }
  0xc7   : > { %v267_v20 = vadd.f32 %v266_v18, %v265_v15  ;;  %v331_v40 = vrot.slane %v330_v38, 4 }
  0xc8   : > { %563 = vmatprep.subr.msk.bf16.mxu0 %vm371_vm1, %v366_v19  ;;  %v337_v39 = vsel %vm329_vm5, %v327_v37, 0.0 }
  0xc9   : > { %v268_v22 = vrot.slane %v267_v20, 2  ;;  %379 = vmatpush1.bf16.msra.mxu0 %v373_v21  ;;  %v338_v41 = vrot.slane %v337_v39, 4  ;;  %v332_v42 = vadd.f32 %v331_v40, %v330_v38 }
  0xcb   : > { %v269_v23 = vadd.f32 %v268_v22, %v267_v20  ;;  %v339_v43 = vadd.f32 %v338_v41, %v337_v39  ;;  %v333_v44 = vrot.slane %v332_v42, 2 }
  0xcd   : > { %v270_v24 = vrot.slane %v269_v23, 1  ;;  %v340_v45 = vrot.slane %v339_v43, 2  ;;  %v334_v46 = vadd.f32 %v333_v44, %v332_v42 }
  0xcf   : > { %v271_v25 = vadd.f32 %v270_v24, %v269_v23  ;;  %v341_v47 = vadd.f32 %v340_v45, %v339_v43  ;;  %v335_v48 = vrot.slane %v334_v46, 1 }
  0xd1   : > { %638 = vrsqrt.f32 %v271_v25  ;;  %vm274_vm2 = vcmp.eq.f32.partialorder %v271_v25, inf  ;;  %v277_v28 = vand.u32 2147483648, %v271_v25  ;;  %vm276_vm3 = vcmp.eq.f32.partialorder %v271_v25, 0.0 }
  0xd2   : > { %v342_v49 = vrot.slane %v341_v47, 1  ;;  %v336_v50 = vadd.f32 %v335_v48, %v334_v46 }
  0xd4   : > { %v343_v51 = vadd.f32 %v342_v49, %v341_v47  ;;  %vm346_vm6 = vcmp.eq.f32.partialorder %v336_v50, inf  ;;  %v349_v57 = vand.u32 2147483648, %v336_v50  ;;  %vm348_vm8 = vcmp.eq.f32.partialorder %v336_v50, 0.0 }
  0xd6   : > { %vm353_vm7 = vcmp.eq.f32.partialorder %v343_v51, inf  ;;  %v356_v59 = vand.u32 2147483648, %v343_v51  ;;  %vm355_vm9 = vcmp.eq.f32.partialorder %v343_v51, 0.0 }
  0xdb   : > { %v639_v26 = vpop.eup %638 }
  0xdc   : > { %v273_v27 = vmul.f32 %v639_v26, %v271_v25 }
  0xde   : > { %v275_v29 = vsel %vm274_vm2, %v271_v25, %v273_v27 }
  0xdf   : > { %v278_v30 = vsel %vm276_vm3, %v277_v28, %v275_v29 }
  0xe0   : > { %v279_v31 = vmax.f32 %v278_v30, 1e-12 }
  0xe2   : > { %640 = vrcp.f32 %v279_v31 }
  0xe3   : > { %642 = vrsqrt.f32 %v336_v50 }
  0xe4   : > { %644 = vrsqrt.f32 %v343_v51 }
  0xec   : > { %v641_v32 = vpop.eup %640 }
  0xed   : > { %v281_v33 = vmul.f32 %v641_v32, %v262_v11  ;;  %v643_v52 = vpop.eup %642 }
  0xee   : > { %v645_v53 = vpop.eup %644  ;;  %v345_v54 = vmul.f32 %v643_v52, %v336_v50 }
  0xef   : > { %282 = vxpose.xlu0.b32.start.end [1/1] (short) (narrow) %v281_v33, 8  ;;  %v352_v55 = vmul.f32 %v645_v53, %v343_v51 }
  0xf0   : > { %v347_v56 = vsel %vm346_vm6, %v336_v50, %v345_v54 }
  0xf1   : > { %v354_v58 = vsel %vm353_vm7, %v343_v51, %v352_v55  ;;  %v350_v60 = vsel %vm348_vm8, %v349_v57, %v347_v56 }
  0xf2   : > { %v357_v61 = vsel %vm355_vm9, %v356_v59, %v354_v58  ;;  %v358_v62 = vmax.f32 %v350_v60, 1e-12 }
  0xf3   : > { %v359_v63 = vmax.f32 %v357_v61, 1e-12 }
  0xf4   : > { %646 = vrcp.f32 %v358_v62 }
  0xf5   : > { %648 = vrcp.f32 %v359_v63 }
  0xfe   : > { %v647_v0 = vpop.eup %646 }
  0xff   : > { %v649_v2 = vpop.eup %648 }
 0x16f   : > { %v298_v34 = vpop.trf.xlu0 }
 0x170   : > { %v314_v35 = vpack.c.bf16 %v298_v34, %v298_v34 }
 0x172   : > { %564 = vmatmul.mubr.msk.bf16.vlgmr.msra.gmra.mrb[0].mxu0 %vm367_vm4, %v314_v35 }
 0x245   : > { %v412_v1 = vpop.f32.mrb[0].mxu0 }
 0x246   : > { %v419_v3 = vmul.f32 %v647_v0, %v412_v1  ;;  %v414_v4 = vpop.f32.mrb[1].mxu0 }
 0x247   : > { %v420_v5 = vmul.f32 %v649_v2, %v414_v4  ;;  %v416_v6 = vpop.f32.mrb[2].mxu0 }
 0x248   : > { %421 = vst [vmem:[%s238_s30] sm:$0xff] %v419_v3  ;;  %v417_v7 = vpop.f32.mrb[3].mxu0 }
 0x249   : > { %422 = vst [vmem:[%s238_s30 + $0x8] sm:$0xff] %v420_v5 }
 0x24a   : > { %693 = shalt.err (!%p690_p4)
}
 0x24b   : > { %s694_s5 = scalar_lea.hbm %s920_s18, 256  ;;  %s698_s21 = scalar_lea.hbm %s972_s3, 512 }
 0x24c   : > { %p695_p10 = scmp.ne.s32.totalorder %s920_s18, %s694_s5  ;;  %p699_p2 = scmp.lt.u32.totalorder %s920_s18, %s972_s3 }
 0x24d   : > { %p700_p5 = scmp.lt.u32.totalorder %s698_s21, %s694_s5  ;;  %p702_p8 = scmp.lt.u32.totalorder %s694_s5, %s920_s18 }
 0x24e   : > { %p696_p12 = pnand %p695_p10, %p981_p11 }
 0x24f   : > { %p701_p9 = por %p700_p5, %p699_p2 }
 0x250   : > { %p697_p1 = pneg %p696_p12 }
 0x251   : > { %p703_p0 = por %p702_p8, %p701_p9 }
 0x253   : > { %p704_p7 = pnand %p703_p0, %p697_p1 }
 0x255   : > { %707 = shalt.err (!%p704_p7)
}
 0x256   : > { %574 = dma.vmem_to_hbm [thread:$0]  (%p981_p11), %s922_s4, 256, %s920_s18, %s424_s15  }
 0x257 PF: > { %s452_s28 = sand.u32 1, %s742_s12   ;;  %p982_p13 = scmp.ne.s32.totalorder %s977_s27, 0 }
 0x258   : > { %p983_p3 = scmp.ge.s32.totalorder %s762_s17, 2  ;;  %s453_s29 = scalar_lea.sflag [#allocation4], %s452_s28 }
 0x25a   : > { %p581_p6 = pnand %p983_p3, %p982_p13 }
 0x25c   : > { %737 = dma.done.wait (!%p581_p6), %s453_s29, 256  }
 0x25d   : > { %739 = vsyncadd (!%p581_p6), %s453_s29, 4294967040  ;;  %s19_s17 = sadd.s32 1, %s762_s17   ;;  %s984_s12 = smov %s746_s13 }
 0x25e   : > { %p16_p4 = scmp.ge.s32.totalorder %s19_s17, 4   ;;  %s985_s13 = smov %s750_s14 }
 0x25f   : > { %s986_s14 = smov %s844_s26  ;;  %s987_s15 = smov %s758_s16 }
 0x260   : > { %s988_s16 = smov %s990_s20  ;;  %18 = sbr.rel (!%p16_p4) target bundleno = 6 (0x6), region = 83 }
 0x267   :  { %458 = vsyncpa [#allocation3], 1 }
 0x268   :  { %460 = vsyncpa [#allocation3 + $0x1], 1 }
 0x269   :  { %461 = vsyncpa [#allocation4], 1 }
 0x26a   :  { %463 = vsyncpa [#allocation4 + $0x1], 1 }

</bundles_post_ra>
